<compile_context>
chip_gen: v6e
topology: v6e:2x2x1
jax: 0.10.0
libtpu: 0.0.40
codegen_flags: <defaults>
</compile_context>

<pallas_src>
import functools

import jax
import jax.numpy as jnp
import numpy as np
from jax import lax
from jax.experimental import pallas as pl
from jax.experimental.pallas import tpu as pltpu


def _round_up(a, b):
    return ((a + b - 1) // b) * b


def _largest_divisor_leq(n, cap):
    """Largest divisor of n that is <= cap (>= 1)."""
    best = 1
    for d in range(1, max(1, cap) + 1):
        if n % d == 0:
            best = d
    return best


# ----------------------------- Pallas kernel ------------------------------ #
def _conv_kernel(x_ref, w_ref, b_ref, o_ref, rhs_ref, *,
                 offs, out_len, stride, b_blk):
    """Tap-folded conv for a block of b_blk images.

    x_ref   : (b_blk, Cin, Lin)        flattened, padded images (bf16)
    w_ref   : (Cout, KH*KW*Cin)        folded weight matrix (bf16)
    b_ref   : (Cout, 1)                bias (f32)
    o_ref   : (b_blk, Cout, out_len)   flattened output, padded-width coords
    rhs_ref : (KH*KW*Cin, out_len)     VMEM scratch (stacked shifted windows)
    """
    cin = x_ref.shape[1]
    cout = w_ref.shape[0]

    # Weights / bias resident across the whole inner batch loop.
    w = w_ref[...]                                              # (Cout, K)
    bias = jnp.broadcast_to(b_ref[...], (cout, out_len))        # hoisted once

    def body(i, carry):
        if stride == 1:
            x = x_ref[i]                                        # (Cin, Lin)
            for t, off in enumerate(offs):                      # static taps
                rhs_ref[t * cin:(t + 1) * cin, :] = x[:, off:off + out_len]
        else:
            # Direct strided-window path: absorb the conv stride into the
            # lane read; no oversized stride-1 output is ever produced.
            for t, off in enumerate(offs):
                rhs_ref[t * cin:(t + 1) * cin, :] = x_ref[
                    i, :, pl.ds(off, out_len, stride=stride)]
        acc = jnp.dot(w, rhs_ref[...],                          # one MXU matmul
                      preferred_element_type=jnp.float32)       # K = Cin*KH*KW
        o_ref[i] = (acc + bias).astype(o_ref.dtype)
        return carry

    lax.fori_loop(0, b_blk, body, 0, unroll=True)


# ------------------------------ conv wrapper ------------------------------- #
def pallas_conv2d(x, weight, bias, *, stride, padding, act,
                  compute_dtype=jnp.bfloat16, out_dtype=jnp.float32):
    """Conv2d(ReLU?(x)) in NCHW. x:(N,Cin,H,W) w:(Cout,Cin,KH,KW) b:(Cout,)."""
    N, C, H, W = x.shape
    Cout, _, KH, KW = weight.shape
    s = int(stride)

    Hp, Wp = H + 2 * padding, W + 2 * padding
    OH = (Hp - KH) // s + 1
    OW = (Wp - KW) // s + 1

    # Lane-dense output: one padded-width (Wp) row per output row; columns
    # j >= OW are junk and sliced off on the host (cheap narrow slice).
    M = OH * Wp
    L = _round_up(M, 128)
    off_max = (KH - 1) * Wp + (KW - 1)
    Lin = _round_up(off_max + s * (L - 1) + 1, 128)     # 128-aligned input window

    # --- single fused host prep pass -------------------------------------- #
    # ReLU in f32 (free on v5e's VPU), cast to bf16, then ONE pad that adds the
    # spatial halo AND enough extra rows to cover the flat tail (>= Lin).
    xr = jnp.maximum(x, 0.0) if act else x
    xb = xr.astype(compute_dtype)
    extra_rows = 0
    if Lin > Hp * Wp:
        extra_rows = -(-(Lin - Hp * Wp) // Wp)
    xp = jnp.pad(xb, ((0, 0), (0, 0),
                      (padding, padding + extra_rows), (padding, padding)))
    xf = xp.reshape(N, C, (Hp + extra_rows) * Wp)       # Ltot >= Lin

    # Folded weight: row order (kh, kw, c) matches the RHS stacking order.
    K = KH * KW * C
    w2 = weight.transpose(0, 2, 3, 1).reshape(Cout, K).astype(compute_dtype)
    b2 = bias.reshape(Cout, 1).astype(jnp.float32)

    offs = tuple(kh * Wp + kw for kh in range(KH) for kw in range(KW))

    # Images per grid step: amortize the ~0.35us/step pipeline bubble, but keep
    # >= 2 parallel steps whenever N >= 2 so both v7x TensorCores get work.
    b_blk = _largest_divisor_leq(N, min(max(1, N // 2), 8))
    grid = (N // b_blk,)

    # TODO(synk): for large layers (big Cin*Cout or big OH*Wp) add OH/channel
    # tiling with an "arbitrary" reduction axis; size those blocks against v7x's
    # 64 MiB VMEM (not v5e/v6e's 128 MiB). At CIFAR scale everything fits easily.
    out_flat = pl.pallas_call(
        functools.partial(_conv_kernel, offs=offs, out_len=L, stride=s,
                          b_blk=b_blk),
        out_shape=jax.ShapeDtypeStruct((N, Cout, L), out_dtype),
        grid_spec=pltpu.PrefetchScalarGridSpec(
            num_scalar_prefetch=0,
            grid=grid,
            in_specs=[
                pl.BlockSpec((b_blk, C, Lin), lambda n: (n, 0, 0)),   # images
                pl.BlockSpec((Cout, K), lambda n: (0, 0)),            # weights
                pl.BlockSpec((Cout, 1), lambda n: (0, 0)),            # bias
            ],
            out_specs=pl.BlockSpec((b_blk, Cout, L), lambda n: (n, 0, 0)),
            scratch_shapes=[pltpu.VMEM((K, L), compute_dtype)],       # RHS
        ),
        compiler_params=pltpu.CompilerParams(
            dimension_semantics=("parallel",),   # batch steps across v7x TCs
            vmem_limit_bytes=32 * 1024 * 1024,   # safe on v5e/v6e/v7x
        ),
    )(xf, w2, b2)

    # Padded-width coords -> NCHW: free reshape + narrow column slice only.
    y = out_flat[:, :, :M].reshape(N, Cout, OH, Wp)[:, :, :, :OW]
    return y


# ----------------------------- module wrapper ------------------------------ #
def _spectral_normalize(w_flat_oc_k, u, n_iter=1, eps=1e-12):
    """PyTorch-style spectral norm on weight reshaped to (out_ch, K)."""
    wm = w_flat_oc_k
    v = None
    for _ in range(n_iter):
        v = wm.T @ u
        v = v / (jnp.linalg.norm(v) + eps)
        u = wm @ v
        u = u / (jnp.linalg.norm(u) + eps)
    sigma = u @ (wm @ v)
    return wm / sigma


class PallasConv:
    """Mirror of the PyTorch `Conv` module (ReLU? -> Conv2d, optional SN)."""

    def __init__(self, in_ch, out_ch, kernel_size, stride, padding,
                 sn, act, key):
        self.in_ch, self.out_ch = in_ch, out_ch
        self.k, self.stride, self.padding = kernel_size, stride, padding
        self.sn, self.act = sn, act

        k_w, k_b, k_u = jax.random.split(key, 3)
        fan_in = in_ch * kernel_size * kernel_size
        bound = 1.0 / np.sqrt(fan_in)
        self.weight = jax.random.uniform(
            k_w, (out_ch, in_ch, kernel_size, kernel_size),
            minval=-bound, maxval=bound, dtype=jnp.float32)
        self.bias = jax.random.uniform(
            k_b, (out_ch,), minval=-bound, maxval=bound, dtype=jnp.float32)
        # TODO(synk): PyTorch's spectral_norm updates `u` in-place each training
        # forward; here u is a fixed buffer (eval-mode behaviour).
        self._u = jax.random.normal(k_u, (out_ch,), dtype=jnp.float32)

    def __call__(self, x):
        w = self.weight
        if self.sn:
            w2 = _spectral_normalize(w.reshape(self.out_ch, -1), self._u)
            w = w2.reshape(self.weight.shape)
        return pallas_conv2d(x, w, self.bias, stride=self.stride,
                             padding=self.padding, act=self.act)


# ---------------------------------- main ----------------------------------- #
if __name__ == "__main__":
    key = jax.random.PRNGKey(0)
    k_param, k_x = jax.random.split(key)

    # Small CIFAR-ish config: in_ch=4, out_ch=8, 3x3, stride=1, pad=1, sn+act.
    conv = PallasConv(in_ch=4, out_ch=8, kernel_size=3, stride=1, padding=1,
                      sn=True, act=True, key=k_param)
    x = jax.random.normal(k_x, (2, 4, 16, 16), dtype=jnp.float32)   # NCHW

    y = jax.jit(lambda v: conv(v))(x)
    y = jax.block_until_ready(y)

    # Reference: XLA conv on the same bf16-rounded operands (the kernel feeds
    # the MXU bf16 with f32 accumulation), spectral-normalized weight, f32 bias.
    w_sn = _spectral_normalize(conv.weight.reshape(conv.out_ch, -1), conv._u)
    w_sn = w_sn.reshape(conv.weight.shape)
    xb = jnp.maximum(x, 0.0).astype(jnp.bfloat16).astype(jnp.float32)
    wb = w_sn.astype(jnp.bfloat16).astype(jnp.float32)
    y_ref = lax.conv_general_dilated(
        xb, wb, window_strides=(1, 1), padding=((1, 1), (1, 1)),
        dimension_numbers=("NCHW", "OIHW", "NCHW"),
        precision=lax.Precision.HIGHEST)
    y_ref = y_ref + conv.bias.reshape(1, -1, 1, 1)

    assert y.shape == (2, 8, 16, 16), y.shape
    np.testing.assert_allclose(np.asarray(y), np.asarray(y_ref),
                               rtol=5e-4, atol=5e-4)
    print("KERNEL_OK")
</pallas_src>

<mosaic_0001>
module attributes {stable_mosaic.version = 11 : i64} {
  func.func @_conv_kernel(%arg0: i32, %arg1: memref<1x4x512xbf16, #tpu.memory_space<vmem>>, %arg2: memref<8x36xbf16, #tpu.memory_space<vmem>>, %arg3: memref<8x1xf32, #tpu.memory_space<vmem>>, %arg4: memref<1x8x384xf32, #tpu.memory_space<vmem>>, %arg5: memref<36x384xbf16, #tpu.memory_space<vmem>>) attributes {dimension_semantics = [#tpu.dimension_semantics<parallel>], iteration_bounds = array<i64: 2>, scalar_prefetch = 0 : i64, scratch_operands = 1 : i64, tpu.core_type = #tpu.core_type<tc>, window_params = [{transform_indices = @transform_0, window_bounds = array<i64: 1, 4, 512>}, {pipeline_mode = #tpu.pipeline_mode<synchronous>, transform_indices = @transform_1, window_bounds = array<i64: 8, 36>}, {pipeline_mode = #tpu.pipeline_mode<synchronous>, transform_indices = @transform_2, window_bounds = array<i64: 8, 1>}, {transform_indices = @transform_3, window_bounds = array<i64: 1, 8, 384>}]} {
    %c0 = arith.constant 0 : index
    %c0_0 = arith.constant 0 : index
    %0 = vector.load %arg2[%c0, %c0_0] : memref<8x36xbf16, #tpu.memory_space<vmem>>, vector<8x36xbf16>
    %c0_1 = arith.constant 0 : index
    %c0_2 = arith.constant 0 : index
    %1 = vector.load %arg3[%c0_1, %c0_2] : memref<8x1xf32, #tpu.memory_space<vmem>>, vector<8x1xf32>
    %2 = vector.shape_cast %1 : vector<8x1xf32> to vector<8x1xf32>
    %3 = vector.broadcast %2 : vector<8x1xf32> to vector<8x384xf32>
    %c0_i32 = arith.constant 0 : i32
    %4 = arith.index_cast %c0_i32 : i32 to index
    %c0_3 = arith.constant 0 : index
    %c0_4 = arith.constant 0 : index
    %5 = vector.load %arg1[%4, %c0_3, %c0_4] : memref<1x4x512xbf16, #tpu.memory_space<vmem>>, vector<1x4x512xbf16>
    %6 = vector.shape_cast %5 : vector<1x4x512xbf16> to vector<4x512xbf16>
    %7 = vector.extract_strided_slice %6 {offsets = [0, 0], sizes = [4, 384], strides = [1, 1]} : vector<4x512xbf16> to vector<4x384xbf16>
    %c0_5 = arith.constant 0 : index
    %c0_6 = arith.constant 0 : index
    %8 = vector.load %arg5[%c0_5, %c0_6] : memref<36x384xbf16, #tpu.memory_space<vmem>>, vector<4x384xbf16>
    tpu.vector_store %arg5[%c0_5, %c0_6], %7 {strides = array<i32>} : memref<36x384xbf16, #tpu.memory_space<vmem>>, vector<4x384xbf16>,
    %9 = vector.extract_strided_slice %6 {offsets = [0, 1], sizes = [4, 384], strides = [1, 1]} : vector<4x512xbf16> to vector<4x384xbf16>
    %c4 = arith.constant 4 : index
    %c0_7 = arith.constant 0 : index
    %10 = vector.load %arg5[%c4, %c0_7] : memref<36x384xbf16, #tpu.memory_space<vmem>>, vector<4x384xbf16>
    tpu.vector_store %arg5[%c4, %c0_7], %9 {strides = array<i32>} : memref<36x384xbf16, #tpu.memory_space<vmem>>, vector<4x384xbf16>,
    %11 = vector.extract_strided_slice %6 {offsets = [0, 2], sizes = [4, 384], strides = [1, 1]} : vector<4x512xbf16> to vector<4x384xbf16>
    %c8 = arith.constant 8 : index
    %c0_8 = arith.constant 0 : index
    %12 = vector.load %arg5[%c8, %c0_8] : memref<36x384xbf16, #tpu.memory_space<vmem>>, vector<4x384xbf16>
    tpu.vector_store %arg5[%c8, %c0_8], %11 {strides = array<i32>} : memref<36x384xbf16, #tpu.memory_space<vmem>>, vector<4x384xbf16>,
    %13 = vector.extract_strided_slice %6 {offsets = [0, 18], sizes = [4, 384], strides = [1, 1]} : vector<4x512xbf16> to vector<4x384xbf16>
    %c12 = arith.constant 12 : index
    %c0_9 = arith.constant 0 : index
    %14 = vector.load %arg5[%c12, %c0_9] : memref<36x384xbf16, #tpu.memory_space<vmem>>, vector<4x384xbf16>
    tpu.vector_store %arg5[%c12, %c0_9], %13 {strides = array<i32>} : memref<36x384xbf16, #tpu.memory_space<vmem>>, vector<4x384xbf16>,
    %15 = vector.extract_strided_slice %6 {offsets = [0, 19], sizes = [4, 384], strides = [1, 1]} : vector<4x512xbf16> to vector<4x384xbf16>
    %c16 = arith.constant 16 : index
    %c0_10 = arith.constant 0 : index
    %16 = vector.load %arg5[%c16, %c0_10] : memref<36x384xbf16, #tpu.memory_space<vmem>>, vector<4x384xbf16>
    tpu.vector_store %arg5[%c16, %c0_10], %15 {strides = array<i32>} : memref<36x384xbf16, #tpu.memory_space<vmem>>, vector<4x384xbf16>,
    %17 = vector.extract_strided_slice %6 {offsets = [0, 20], sizes = [4, 384], strides = [1, 1]} : vector<4x512xbf16> to vector<4x384xbf16>
    %c20 = arith.constant 20 : index
    %c0_11 = arith.constant 0 : index
    %18 = vector.load %arg5[%c20, %c0_11] : memref<36x384xbf16, #tpu.memory_space<vmem>>, vector<4x384xbf16>
    tpu.vector_store %arg5[%c20, %c0_11], %17 {strides = array<i32>} : memref<36x384xbf16, #tpu.memory_space<vmem>>, vector<4x384xbf16>,
    %19 = vector.extract_strided_slice %6 {offsets = [0, 36], sizes = [4, 384], strides = [1, 1]} : vector<4x512xbf16> to vector<4x384xbf16>
    %c24 = arith.constant 24 : index
    %c0_12 = arith.constant 0 : index
    %20 = vector.load %arg5[%c24, %c0_12] : memref<36x384xbf16, #tpu.memory_space<vmem>>, vector<4x384xbf16>
    tpu.vector_store %arg5[%c24, %c0_12], %19 {strides = array<i32>} : memref<36x384xbf16, #tpu.memory_space<vmem>>, vector<4x384xbf16>,
    %21 = vector.extract_strided_slice %6 {offsets = [0, 37], sizes = [4, 384], strides = [1, 1]} : vector<4x512xbf16> to vector<4x384xbf16>
    %c28 = arith.constant 28 : index
    %c0_13 = arith.constant 0 : index
    %22 = vector.load %arg5[%c28, %c0_13] : memref<36x384xbf16, #tpu.memory_space<vmem>>, vector<4x384xbf16>
    tpu.vector_store %arg5[%c28, %c0_13], %21 {strides = array<i32>} : memref<36x384xbf16, #tpu.memory_space<vmem>>, vector<4x384xbf16>,
    %23 = vector.extract_strided_slice %6 {offsets = [0, 38], sizes = [4, 384], strides = [1, 1]} : vector<4x512xbf16> to vector<4x384xbf16>
    %c32 = arith.constant 32 : index
    %c0_14 = arith.constant 0 : index
    %24 = vector.load %arg5[%c32, %c0_14] : memref<36x384xbf16, #tpu.memory_space<vmem>>, vector<4x384xbf16>
    tpu.vector_store %arg5[%c32, %c0_14], %23 {strides = array<i32>} : memref<36x384xbf16, #tpu.memory_space<vmem>>, vector<4x384xbf16>,
    %c0_15 = arith.constant 0 : index
    %c0_16 = arith.constant 0 : index
    %25 = vector.load %arg5[%c0_15, %c0_16] : memref<36x384xbf16, #tpu.memory_space<vmem>>, vector<36x384xbf16>
    %cst = arith.constant dense<0.000000e+00> : vector<8x384xf32>
    %26 = tpu.matmul %0, %25, %cst {dimension_numbers = #tpu.dot_dimension_numbers<[1], [0], [0], [1], [0, 0, 1, 1], [], []>} : vector<8x36xbf16>, vector<36x384xbf16>, vector<8x384xf32> -> vector<8x384xf32>
    %27 = arith.addf %26, %3 : vector<8x384xf32>
    %28 = arith.index_cast %c0_i32 : i32 to index
    %c0_17 = arith.constant 0 : index
    %c0_18 = arith.constant 0 : index
    %29 = vector.load %arg4[%28, %c0_17, %c0_18] : memref<1x8x384xf32, #tpu.memory_space<vmem>>, vector<1x8x384xf32>
    %30 = vector.shape_cast %29 : vector<1x8x384xf32> to vector<8x384xf32>
    %31 = vector.shape_cast %27 : vector<8x384xf32> to vector<1x8x384xf32>
    tpu.vector_store %arg4[%28, %c0_17, %c0_18], %31 {strides = array<i32>} : memref<1x8x384xf32, #tpu.memory_space<vmem>>, vector<1x8x384xf32>,
    %c1_i32 = arith.constant 1 : i32
    return
  }
  func.func @transform_0(%arg0: i32) -> (i32, i32, i32) {
    %c0_i32 = arith.constant 0 : i32
    %c0_i32_0 = arith.constant 0 : i32
    %c0_i32_1 = arith.constant 0 : i32
    return %arg0, %c0_i32, %c0_i32_0 : i32, i32, i32
  }
  func.func @transform_1(%arg0: i32) -> (i32, i32) {
    %c0_i32 = arith.constant 0 : i32
    %c0_i32_0 = arith.constant 0 : i32
    %c0_i32_1 = arith.constant 0 : i32
    return %c0_i32, %c0_i32_0 : i32, i32
  }
  func.func @transform_2(%arg0: i32) -> (i32, i32) {
    %c0_i32 = arith.constant 0 : i32
    %c0_i32_0 = arith.constant 0 : i32
    %c0_i32_1 = arith.constant 0 : i32
    return %c0_i32, %c0_i32_0 : i32, i32
  }
  func.func @transform_3(%arg0: i32) -> (i32, i32, i32) {
    %c0_i32 = arith.constant 0 : i32
    %c0_i32_0 = arith.constant 0 : i32
    %c0_i32_1 = arith.constant 0 : i32
    return %arg0, %c0_i32, %c0_i32_0 : i32, i32, i32
  }
}

</mosaic_0001>

<bundles_post_ra>
// kernel: _lambda_.1
= control target key start
LH: loop header
LB: loop body
LE: loop exit
PB: predicated region body
PF: predicated region fallthrough
CT: control target
= control target key end

     0   :  { %s635_s12 = smov 0   ;;  %s681_s0 = inlined_call_operand.vmem [shape: bf16[2,4,522], index: 0, kind: input, shape index: {}]   ;;  %s682_s1 = inlined_call_operand.vmem [shape: bf16[8,36], index: 1, kind: input, shape index: {}]   ;;  %s683_s2 = inlined_call_operand.vmem [shape: f32[8,1], index: 2, kind: input, shape index: {}]   ;;  %s684_s3 = inlined_call_operand.vmem [shape: f32[2,8,384], index: 3, kind: output, shape index: {}]  }
   0x1 LB: > { %s524_s13 = sadd.s32 4294967295, %s601_s12   ;;  %p528_p0 = scmp.ge.s32.totalorder %s601_s12, 1  ;;  %s601_s12 = sphi %s635_s12, %s13_s12  }
   0x2   : > { %p137_p1 = scmp.lt.s32.totalorder %s601_s12, 3 }
   0x4   : > { %p138_p2 = pnand %p528_p0, %p137_p1 }
   0x5   : > { %p161_p3 = scmp.lt.s32.totalorder (!%p138_p2), %s524_s13, 1  ;;  %s604_s18 = smov (!%p138_p2), 109  }
   0x6   : > { %141 = sbr.rel (%p138_p2) target bundleno = 378 (0x17a), region = 32  ;;  %s605_s19 = smov (!%p138_p2), 90  }
   0x7   : > { %s606_s20 = smov (!%p138_p2), 108   ;;  %s607_s21 = smov (!%p138_p2), 92  }
   0x8   : > { %s609_s22 = smov (!%p138_p2), 91   ;;  %s610_s23 = smov (!%p138_p2), 127  }
   0x9   : > { %s611_s24 = smov (!%p138_p2), 126   ;;  %s612_s25 = smov (!%p138_p2), 110  }
   0xb   : > { %v185_v0 = vlaneseq  ;;  %v603_v1 = vmov 1983009808   ;;  %s686_s13 = smov (!%p161_p3, %s524_s13), 1  ;;  %v608_v11 = vmov 0.0   ;;  %vm613_vm0 = vmmov 0   ;;  %v173_v14 = vld [vmem:[%s683_s2] sm:$0xff] }
   0xc   : > { %v183_v2 = vunpack.c.l.s4 %v603_v1  ;;  %s561_s14 = smul.u32 10, %s686_s13  ;;  %551 = vmatprep.subr.bf16.mxu1 %v608_v11  ;;  %557 = vmatprep.mubr.msk.bf16.mxu1 %vm613_vm0, %v608_v11  ;;  %v614_v13 = vmov 0   ;;  %vm272_vm1 = vcmask 883712   ;;  %vm214_vm2 = vcmask 1043456  }
   0xd   : > { %v186_v3 = vshrl.u32 %v185_v0, 7  ;;  %417 = vmatprep.mubr.bf16.mxu0 %v614_v13  ;;  %583 = vset.pattern.permute.xlu0 %v614_v13  ;;  %vm258_vm3 = vcmask 891904   ;;  %vm314_vm4 = vcmask 736256   ;;  %vm286_vm5 = vcmask 752640   ;;  %s562_s30 = smul.u32 24, %s686_s13 }
   0xe   : > { %v184_v4 = vunpack.c.0.s8 %v183_v2  ;;  %s165_s17 = scalar_lea.vmem %s681_s0, %s561_s14  ;;  %vm300_vm6 = vcmask 744448   ;;  %vm375_vm7 = vcmask 1041408   ;;  %vm216_vm8 = vcmask 1039360  }
   0xf   : > { %v179_v6 = vld [vmem:[%s165_s17] sm:$0xff]  ;;  %vm230_vm9 = vcmask 1031168   ;;  %vm244_vm10 = vcmask 900096   ;;  %vm371_vm11 = vcmask 293888   ;;  %s170_s6 = scalar_lea.vmem %s684_s3, %s562_s30 }
  0x10   : > { %v187_v5 = vsub.s32 %v184_v4, %v186_v3  ;;  %531 = vst.sshfl [vmem:[#allocation2] sm:$0xf pattern:$0x76325410] %v179_v6  ;;  %v181_v8 = vcombine.high %v179_v6, %v179_v6  ;;  %v200_v10 = vcombine.low %v179_v6, %v179_v6 }
  0x12   : > { %v188_v7 = vrot.slane %v179_v6, %v187_v5  ;;  %532 = vst.sshfl [vmem:[#allocation2 + $0x8] sm:$0x3 pattern:$0x76325410] %v181_v8  ;;  %v195_v9 = vrot.slane %v181_v8, %v187_v5  ;;  %v207_v12 = vrot.slane %v200_v10, %v187_v5 }
  0x14   : > { %251 = vrot.lane.b32.xlu1 %v188_v7, %s604_s18  ;;  %307 = vrot.lane.b32.xlu0 %v188_v7, %s605_s19 }
  0x18   : > { %267 = vrot.lane.b32.xlu1 %v188_v7, %s606_s20  ;;  %279 = vrot.lane.b32.xlu0 %v188_v7, %s607_s21 }
  0x1c   : > { %253 = vrot.lane.b32.xlu1 %v195_v9, %s604_s18  ;;  %309 = vrot.lane.b32.xlu0 %v195_v9, %s605_s19 }
  0x20   : > { %281 = vrot.lane.b32.xlu1 %v195_v9, %s607_s21  ;;  %265 = vrot.lane.b32.xlu0 %v207_v12, %s606_s20 }
  0x24   : > { %295 = vrot.lane.b32.xlu1 %v188_v7, %s609_s22  ;;  %293 = vrot.lane.b32.xlu0 %v207_v12, %s609_s22 }
  0x28   : > { %210 = vrot.lane.b32.xlu1 %v188_v7, %s610_s23  ;;  %208 = vrot.lane.b32.xlu0 %v207_v12, %s610_s23 }
  0x2c   : > { %225 = vrot.lane.b32.xlu1 %v195_v9, %s611_s24  ;;  %223 = vrot.lane.b32.xlu0 %v188_v7, %s611_s24 }
  0x30   : > { %239 = vrot.lane.b32.xlu1 %v188_v7, %s612_s25  ;;  %237 = vrot.lane.b32.xlu0 %v207_v12, %s612_s25 }
  0x34   : > { %176 = vperm.xlu0 %583, %v173_v14  }
  0x86   : > { %v252_v15 = vpop.permute.xlu1 %251  ;;  %v308_v16 = vpop.permute.xlu0 %307 }
  0x87   : > { %v255_v23 = vrot.slane %v252_v15, 4  ;;  %v311_v24 = vrot.slane %v308_v16, 4 }
  0x8a   : > { %v268_v17 = vpop.permute.xlu1 %267  ;;  %v280_v18 = vpop.permute.xlu0 %279 }
  0x8b   : > { %v270_v19 = vrot.slane %v268_v17, 4  ;;  %v283_v35 = vrot.slane %v280_v18, 4 }
  0x8d   : > { %v274_v20 = vsel %vm272_vm1, %v268_v17, %v270_v19 }
  0x8e   : > { %278 = vst [vmem:[#allocation2 + $0x20] sm:$0xc] %v274_v20  ;;  %v254_v21 = vpop.permute.xlu1 %253  ;;  %v310_v22 = vpop.permute.xlu0 %309  ;;  %v172_v20 = vld [vmem:[%s682_s1] sm:$0xf] }
  0x8f   : > { %v256_v25 = vrot.slane %v254_v21, 4  ;;  %v312_v26 = vrot.slane %v310_v22, 4 }
  0x91   : > { %v257_v27 = vsel %vm214_vm2, %v255_v23, %v256_v25  ;;  %v260_v28 = vsel %vm258_vm3, %v254_v21, %v256_v25  ;;  %v313_v29 = vsel %vm214_vm2, %v311_v24, %v312_v26  ;;  %v316_v30 = vsel %vm314_vm4, %v310_v22, %v312_v26 }
  0x92   : > { %v259_v31 = vsel %vm258_vm3, %v252_v15, %v257_v27  ;;  %264 = vst [vmem:[#allocation2 + $0x20] sm:$0x3] %v260_v28  ;;  %v315_v32 = vsel %vm314_vm4, %v308_v16, %v313_v29  ;;  %320 = vst [vmem:[#allocation2 + $0x38] sm:$0x3] %v316_v30  ;;  %v282_v33 = vpop.permute.xlu1 %281  ;;  %v266_v34 = vpop.permute.xlu0 %265 }
  0x93   : > { %263 = vst [vmem:[#allocation2 + $0x18] sm:$0x33] %v259_v31  ;;  %319 = vst [vmem:[#allocation2 + $0x30] sm:$0x33] %v315_v32  ;;  %v284_v36 = vrot.slane %v282_v33, 4  ;;  %v269_v37 = vrot.slane %v266_v34, 4 }
  0x95   : > { %v285_v38 = vsel %vm214_vm2, %v283_v35, %v284_v36  ;;  %v288_v39 = vsel %vm286_vm5, %v282_v33, %v284_v36  ;;  %v271_v40 = vsel %vm214_vm2, %v269_v37, %v270_v19 }
  0x96   : > { %v287_v41 = vsel %vm286_vm5, %v280_v18, %v285_v38  ;;  %292 = vst [vmem:[#allocation2 + $0x2c] sm:$0x3] %v288_v39  ;;  %v273_v42 = vsel %vm272_vm1, %v266_v34, %v271_v40  ;;  %v296_v43 = vpop.permute.xlu1 %295  ;;  %v294_v44 = vpop.permute.xlu0 %293 }
  0x97   : > { %291 = vst [vmem:[#allocation2 + $0x24] sm:$0x33] %v287_v41  ;;  %277 = vst [vmem:[#allocation2 + $0x18] sm:$0xcc] %v273_v42  ;;  %v298_v45 = vrot.slane %v296_v43, 4  ;;  %v297_v46 = vrot.slane %v294_v44, 4 }
  0x99   : > { %v302_v47 = vsel %vm300_vm6, %v296_v43, %v298_v45  ;;  %v299_v48 = vsel %vm214_vm2, %v297_v46, %v298_v45  ;;  %v585_v49 = vld [vmem:[#allocation2 + $0x38] ss:$0 sps:$4 sm:$0x33]  }
  0x9a   : > { %306 = vst [vmem:[#allocation2 + $0x2c] sm:$0xc] %v302_v47  ;;  %v301_v50 = vsel %vm300_vm6, %v294_v44, %v299_v48  ;;  %v211_v51 = vpop.permute.xlu1 %210  ;;  %v209_v52 = vpop.permute.xlu0 %208  ;;  %v329_v53 = vld [vmem:[#allocation2 + $0x30] sm:$0x33]  ;;  %v383_v57 = vsel %vm375_vm7, %v585_v49, 0 }
  0x9b   : > { %305 = vst [vmem:[#allocation2 + $0x24] sm:$0xcc] %v301_v50  ;;  %v213_v54 = vrot.slane %v211_v51, 4  ;;  %v212_v55 = vrot.slane %v209_v52, 4  ;;  %v540_v56 = vcombine.high %v329_v53, %v329_v53  ;;  %552 = vmatpush3.bf16.msra.mxu1 %v383_v57  ;;  %v539_v58 = vcombine.low %v329_v53, %v329_v53 }
  0x9c   : > { %553 = vmatprep.subr.bf16.mxu1 %v608_v11 }
  0x9d   : > { %v218_v59 = vsel %vm216_vm8, %v211_v51, %v213_v54  ;;  %v215_v60 = vsel %vm214_vm2, %v212_v55, %v213_v54  ;;  %542 = vmatprep.subr.msk.bf16.mxu0 %vm375_vm7, %v540_v56  ;;  %v377_v63 = vsel %vm375_vm7, %v539_v58, 0 }
  0x9e   : > { %222 = vst [vmem:[#allocation2 + $0x8] sm:$0xc] %v218_v59  ;;  %v217_v61 = vsel %vm216_vm8, %v209_v52, %v215_v60  ;;  %v226_v62 = vpop.permute.xlu1 %225  ;;  %v224_v0 = vpop.permute.xlu0 %223  ;;  %396 = vmatpush1.bf16.msra.mxu0 %v377_v63 }
  0x9f   : > { %221 = vst [vmem:[#allocation2] sm:$0xcc] %v217_v61  ;;  %v228_v1 = vrot.slane %v226_v62, 4  ;;  %v227_v2 = vrot.slane %v224_v0, 4 }
  0xa1   : > { %v232_v3 = vsel %vm230_vm9, %v226_v62, %v228_v1  ;;  %v229_v4 = vsel %vm214_vm2, %v227_v2, %v228_v1  ;;  %v587_v5 = vld [vmem:[#allocation2 + $0x20] ss:$12 sps:$4 sm:$0xff]  }
  0xa2   : > { %236 = vst [vmem:[#allocation2 + $0x14] sm:$0x3] %v232_v3  ;;  %v231_v6 = vsel %vm230_vm9, %v224_v0, %v229_v4  ;;  %v240_v7 = vpop.permute.xlu1 %239  ;;  %v238_v8 = vpop.permute.xlu0 %237  ;;  %v588_v9 = vld [vmem:[#allocation2 + $0x1c] ss:$12 sps:$4 sm:$0xff]   ;;  %v590_v10 = vld [vmem:[#allocation2 + $0x18] ss:$12 sps:$4 sm:$0xff]   ;;  %554 = vmatpush3.bf16.msra.mxu1 %v587_v5 }
  0xa3   : > { %235 = vst [vmem:[#allocation2 + $0xc] sm:$0x33] %v231_v6  ;;  %v242_v12 = vrot.slane %v240_v7, 4  ;;  %v241_v13 = vrot.slane %v238_v8, 4  ;;  %397 = vmatprep.subr.bf16.mxu0 %v588_v9  ;;  %555 = vmatprep.subr.bf16.mxu1 %v608_v11 }
  0xa4   : > { %398 = vmatpush1.bf16.msra.mxu0 %v590_v10 }
  0xa5   : > { %v246_v14 = vsel %vm244_vm10, %v240_v7, %v242_v12  ;;  %v243_v15 = vsel %vm214_vm2, %v241_v13, %v242_v12 }
  0xa6   : > { %250 = vst [vmem:[#allocation2 + $0x14] sm:$0xc] %v246_v14  ;;  %v245_v16 = vsel %vm244_vm10, %v238_v8, %v243_v15 }
  0xa7   : > { %249 = vst [vmem:[#allocation2 + $0xc] sm:$0xcc] %v245_v16 }
  0xad   : > { %v591_v17 = vld [vmem:[#allocation2 + $0x8] ss:$12 sps:$4 sm:$0xff]  }
  0xae   : > { %v592_v18 = vld [vmem:[#allocation2 + $0x4] ss:$12 sps:$4 sm:$0xff]   ;;  %v594_v19 = vld [vmem:[#allocation2] ss:$12 sps:$4 sm:$0xff]   ;;  %556 = vmatpush3.bf16.msra.mxu1 %v591_v17 }
  0xaf   : > { %399 = vmatprep.subr.bf16.mxu0 %v592_v18  ;;  %v177_v11 = vpop.permute.xlu0 %176 }
  0xb0   : > { %400 = vmatpush1.bf16.msra.mxu0 %v594_v19 }
  0xb1   : > { %558 = vmatmul.mubr.msk.bf16.vlgmr.msra.gmra.mxu1 %vm371_vm11, %v172_v20 }
  0xb3   : > { %543 = vmatmul.mubr.msk.bf16.vlgmr.msra.gmra.mxu0 %vm371_vm11, %v172_v20 }
 0x171   : > { %v460_v21 = vpop.f32.mrf.mxu1 }
 0x172   : > { %v461_v22 = vadd.f32 %v460_v21, %v177_v11 }
 0x173   : > { %v419_v23 = vpop.f32.mrf.mxu0  ;;  %v559_v24 = vpop.f32.mrf.mxu1 }
 0x174   : > { %v420_v25 = vadd.f32 %v419_v23, %v177_v11  ;;  %468 = vst [vmem:[%s170_s6 + $0x10] sm:$0xff] %v461_v22 }
 0x175   : > { %v421_v26 = vpop.f32.mrf.mxu0  ;;  %v463_v27 = vpop.f32.mrf.mxu1 }
 0x176   : > { %466 = vst [vmem:[%s170_s6] sm:$0xff] %v420_v25  ;;  %v422_v28 = vadd.f32 %v421_v26, %v177_v11 }
 0x177   : > { %v423_v29 = vpop.f32.mrf.mxu0  ;;  %v560_v30 = vpop.f32.mrf.mxu1 }
 0x178   : > { %467 = vst [vmem:[%s170_s6 + $0x8] sm:$0xff] %v422_v28 }
 0x179   : > { %v424_v31 = vpop.f32.mrf.mxu0 }
 0x17a PF: > { %s13_s12 = sadd.s32 1, %s601_s12  }
 0x17b   : > { %p10_p4 = scmp.ge.s32.totalorder %s13_s12, 4  }
 0x17d   :  { %12 = sbr.rel (!%p10_p4) target bundleno = 1 (0x1), region = 62 }

</bundles_post_ra>
